<compile_context>
chip_gen: v7x
topology: tpu7x:2x2x1
jax: 0.10.0
libtpu: 0.0.40
codegen_flags: <defaults>
</compile_context>

<pallas_src>
import jax
import jax.numpy as jnp
from jax.experimental import pallas as pl
from jax.experimental.pallas import tpu as pltpu


def _round_up(x, m):
    return (x + m - 1) // m * m


def _vmem_budget_bytes(blocks):
    """Rough per-step VMEM footprint (double-buffered blocks + headroom)."""
    total = 0
    for shape, dtype in blocks:
        itemsize = jnp.dtype(dtype).itemsize
        dims = list(shape)
        lane = _round_up(dims[-1], 128)
        sub = _round_up(dims[-2], 8 * (4 // itemsize)) if len(dims) >= 2 else 1
        lead = 1
        for d in dims[:-2]:
            lead *= d
        total += 2 * lead * sub * lane * itemsize      # x2: double buffering
    total += 4 * 1024 * 1024                           # compiler scratch headroom
    return int(min(max(total, 32 * 1024 * 1024), 64 * 1024 * 1024))


def _conv_bn_mish_kernel(x_ref, w_ref, sb_ref, o_ref):
    """One (image, Cout-tile) step of Mish(BN(Conv2d(x))), im2col fused.

    x_ref:  (Hp, Wp, Cin)   bf16  padded NHWC image (batch dim squeezed)
    w_ref:  (K*K, Cin, Ct)  bf16  weights, tap-major order t = di*K + dj
    sb_ref: (2, Ct)         f32   folded BN scale (row 0) / bias (row 1)
    o_ref:  (H, W, Ct)      bf16  output tile (batch dim squeezed), lane-dense Ct
    """
    H, W, Ct = o_ref.shape
    KK, Cin, _ = w_ref.shape
    K = x_ref.shape[0] - H + 1            # Hp = H + K - 1 (stride 1, autopad)

    scale = sb_ref[0:1, :]                # (1, Ct) f32, hoisted out of the loop
    bias = sb_ref[1:2, :]

    def row_body(h, carry):
        # Accumulate K*K taps for one output row: small MXU matmuls
        # (W, Cin) x (Cin, Ct) with f32 accumulation in registers.
        acc = jnp.zeros((W, Ct), jnp.float32)
        for t in range(KK):
            di, dj = t // K, t % K
            row = x_ref[h + di]                      # (Wp, Cin), dynamic h
            lhs = row[dj:dj + W, :]                  # static column-tap shift
            acc = acc + jnp.dot(lhs, w_ref[t],
                                preferred_element_type=jnp.float32)

        # Folded BatchNorm (eval mode) + Mish, all f32.
        y = acc * scale + bias
        # Mish(y) = y * tanh(softplus(y)) = y * ((1+e^y)^2 - 1)/((1+e^y)^2 + 1)
        # One EUP exp + one approx reciprocal; clamp at 20 where the ratio is
        # exactly 1 in f32.  NOTE: for y << 0 the (v-1) term cancels to 0
        # instead of ~y*e^y (abs err < 1e-7) -- fine for inference.
        u = jnp.exp(jnp.minimum(y, 20.0))
        v = (1.0 + u) * (1.0 + u)
        o_ref[h] = (y * (v - 1.0) *
                    pl.reciprocal(v + 1.0, approx=True)).astype(o_ref.dtype)
        return carry

    jax.lax.fori_loop(0, H, row_body, 0)


def conv_bn_mish_nhwc(x_nhwc, weight_oihw, gamma, beta, running_mean,
                      running_var, eps=1e-5, cout_tile=128):
    """Mish(BatchNorm2d(Conv2d(x))) for NHWC activations (preferred entry
    point -- keeps activations NHWC end-to-end, no transposes)."""
    N, H, W, Cin = x_nhwc.shape
    Cout, Cin_w, K, K2 = weight_oihw.shape
    assert Cin_w == Cin and K == K2 and K % 2 == 1
    p = K // 2                                   # autopad, stride 1

    Hp, Wp = H + 2 * p, W + 2 * p
    Cp = _round_up(Cout, 128)                    # lane-dense output channels
    if Cp % cout_tile != 0:
        cout_tile = 128
    cout_tile = min(cout_tile, Cp)

    # bf16 cast BEFORE padding: halves all pre-kernel HBM traffic.
    x_pad = jnp.pad(x_nhwc.astype(jnp.bfloat16),
                    ((0, 0), (p, p), (p, p), (0, 0)))

    # Weights OIHW -> (K*K, Cin, Cp), tap-major (di*K + dj) matching the kernel.
    w = jnp.transpose(weight_oihw, (2, 3, 1, 0)).reshape(K * K, Cin, Cout)
    w = jnp.pad(w, ((0, 0), (0, 0), (0, Cp - Cout))).astype(jnp.bfloat16)

    # Folded BatchNorm (eval mode): one (2, Cp) f32 array (scale row 0, bias 1).
    scale = (gamma.astype(jnp.float32)
             / jnp.sqrt(running_var.astype(jnp.float32) + eps))
    bias = beta.astype(jnp.float32) - running_mean.astype(jnp.float32) * scale
    sb = jnp.pad(jnp.stack([scale, bias]), ((0, 0), (0, Cp - Cout)))

    grid = (N, Cp // cout_tile)

    vmem_bytes = _vmem_budget_bytes([
        ((Hp, Wp, Cin), jnp.bfloat16),           # x block
        ((K * K, Cin, cout_tile), jnp.bfloat16), # weight block
        ((2, cout_tile), jnp.float32),           # scale/bias block
        ((H, W, cout_tile), jnp.bfloat16),       # output block
    ])

    out = pl.pallas_call(
        _conv_bn_mish_kernel,
        out_shape=jax.ShapeDtypeStruct((N, H, W, Cp), jnp.bfloat16),
        grid=grid,
        in_specs=[
            pl.BlockSpec((None, Hp, Wp, Cin), lambda n, c: (n, 0, 0, 0)),
            pl.BlockSpec((K * K, Cin, cout_tile), lambda n, c: (0, 0, c)),
            pl.BlockSpec((2, cout_tile), lambda n, c: (0, c)),
        ],
        out_specs=pl.BlockSpec((None, H, W, cout_tile),
                               lambda n, c: (n, 0, 0, c)),
        compiler_params=pltpu.CompilerParams(
            dimension_semantics=("parallel", "parallel"),
            vmem_limit_bytes=vmem_bytes),
    )(x_pad, w, sb)

    if Cp != Cout:
        out = out[..., :Cout]
    return out


def conv_bn_mish(x_nchw, weight_oihw, gamma, beta, running_mean, running_var,
                 eps=1e-5):
    """NCHW wrapper matching the PyTorch module's interface.

    NOTE: each NCHW<->NHWC transpose is a full HBM pass in XLA; for stacked
    layers keep activations NHWC and call conv_bn_mish_nhwc directly.
    """
    x_nhwc = jnp.transpose(x_nchw, (0, 2, 3, 1))
    out = conv_bn_mish_nhwc(x_nhwc, weight_oihw, gamma, beta, running_mean,
                            running_var, eps=eps)
    return jnp.transpose(out, (0, 3, 1, 2))


def _reference(x_nchw, weight_oihw, gamma, beta, running_mean, running_var,
               eps=1e-5):
    """Pure-JAX f32 reference of Mish(BN(Conv(x))) for correctness checking."""
    K = weight_oihw.shape[2]
    p = K // 2
    y = jax.lax.conv_general_dilated(
        x_nchw.astype(jnp.float32), weight_oihw.astype(jnp.float32),
        window_strides=(1, 1), padding=((p, p), (p, p)),
        dimension_numbers=("NCHW", "OIHW", "NCHW"),
        precision=jax.lax.Precision.HIGHEST)
    sc = (gamma / jnp.sqrt(running_var + eps))[None, :, None, None]
    bi = (beta - running_mean * gamma / jnp.sqrt(running_var + eps))[
        None, :, None, None]
    y = y * sc + bi
    return y * jnp.tanh(jax.nn.softplus(y))


if __name__ == "__main__":
    key = jax.random.PRNGKey(0)
    k_x, k_w, k_g, k_b, k_m, k_v = jax.random.split(key, 6)

    # Conv(c1=4, c2=8, k=3, s=1)  ->  x: (N=2, C=4, H=16, W=16)
    N, C1, C2, K, H, W = 2, 4, 8, 3, 16, 16

    x = jax.random.normal(k_x, (N, C1, H, W), jnp.float32)
    weight = jax.random.normal(k_w, (C2, C1, K, K), jnp.float32) * 0.1
    gamma = 1.0 + 0.1 * jax.random.normal(k_g, (C2,), jnp.float32)
    beta = 0.1 * jax.random.normal(k_b, (C2,), jnp.float32)
    running_mean = 0.1 * jax.random.normal(k_m, (C2,), jnp.float32)
    running_var = jax.random.uniform(k_v, (C2,), jnp.float32, 0.5, 1.5)

    out = conv_bn_mish(x, weight, gamma, beta, running_mean, running_var)
    out = jax.block_until_ready(out)

    ref = _reference(x, weight, gamma, beta, running_mean, running_var)
    assert out.shape == (N, C2, H, W), out.shape
    # bf16 matmul inputs, bf16 output and approx reciprocal in the Mish
    # epilogue -> loosened tolerance vs the f32 reference.
    err = jnp.max(jnp.abs(out.astype(jnp.float32) - ref))
    assert jnp.allclose(out.astype(jnp.float32), ref, rtol=5e-2, atol=5e-2), (
        float(err))

    print("KERNEL_OK")
</pallas_src>

<mosaic_0001>
module attributes {stable_mosaic.version = 11 : i64} {
  func.func @_conv_bn_mish_kernel(%arg0: i32, %arg1: i32, %arg2: memref<1x18x18x4xbf16, #tpu.memory_space<vmem>>, %arg3: memref<9x4x128xbf16, #tpu.memory_space<vmem>>, %arg4: memref<2x128xf32, #tpu.memory_space<vmem>>, %arg5: memref<1x16x16x128xbf16, #tpu.memory_space<vmem>>) attributes {dimension_semantics = [#tpu.dimension_semantics<parallel>, #tpu.dimension_semantics<parallel>], iteration_bounds = array<i64: 2, 1>, scalar_prefetch = 0 : i64, scratch_operands = 0 : i64, tpu.core_type = #tpu.core_type<tc>, window_params = [{transform_indices = @transform_0, window_bounds = array<i64: 1, 18, 18, 4>}, {transform_indices = @transform_1, window_bounds = array<i64: 9, 4, 128>}, {transform_indices = @transform_2, window_bounds = array<i64: 2, 128>}, {transform_indices = @transform_3, window_bounds = array<i64: 1, 16, 16, 128>}]} {
    %c0 = arith.constant 0 : index
    %c0_0 = arith.constant 0 : index
    %0 = vector.load %arg4[%c0, %c0_0] : memref<2x128xf32, #tpu.memory_space<vmem>>, vector<1x128xf32>
    %c1 = arith.constant 1 : index
    %c0_1 = arith.constant 0 : index
    %1 = vector.load %arg4[%c1, %c0_1] : memref<2x128xf32, #tpu.memory_space<vmem>>, vector<1x128xf32>
    %c0_i32 = arith.constant 0 : i32
    %c16_i32 = arith.constant 16 : i32
    %2 = arith.addi %c0_i32, %c16_i32 : i32
    %c1_i32 = arith.constant 1 : i32
    scf.for %arg6 = %c0_i32 to %2 step %c1_i32  : i32 {
      %cst = arith.constant 0.000000e+00 : f32
      %3 = vector.broadcast %cst : f32 to vector<16x128xf32>
      %c0_i32_3 = arith.constant 0 : i32
      %4 = arith.addi %arg6, %c0_i32_3 : i32
      %c0_4 = arith.constant 0 : index
      %5 = arith.index_cast %4 : i32 to index
      %c0_5 = arith.constant 0 : index
      %c0_6 = arith.constant 0 : index
      %6 = vector.load %arg2[%c0_4, %5, %c0_5, %c0_6] : memref<1x18x18x4xbf16, #tpu.memory_space<vmem>>, vector<1x1x18x4xbf16>
      %7 = vector.shape_cast %6 : vector<1x1x18x4xbf16> to vector<18x4xbf16>
      %8 = vector.extract_strided_slice %7 {offsets = [0, 0], sizes = [16, 4], strides = [1, 1]} : vector<18x4xbf16> to vector<16x4xbf16>
      %c0_7 = arith.constant 0 : index
      %c0_8 = arith.constant 0 : index
      %c0_9 = arith.constant 0 : index
      %9 = vector.load %arg3[%c0_7, %c0_8, %c0_9] : memref<9x4x128xbf16, #tpu.memory_space<vmem>>, vector<1x4x128xbf16>
      %10 = vector.shape_cast %9 : vector<1x4x128xbf16> to vector<4x128xbf16>
      %cst_10 = arith.constant dense<0.000000e+00> : vector<16x128xf32>
      %11 = tpu.matmul %8, %10, %cst_10 {dimension_numbers = #tpu.dot_dimension_numbers<[1], [0], [0], [1], [0, 0, 1, 1], [], []>} : vector<16x4xbf16>, vector<4x128xbf16>, vector<16x128xf32> -> vector<16x128xf32>
      %12 = arith.addf %3, %11 : vector<16x128xf32>
      %c0_i32_11 = arith.constant 0 : i32
      %13 = arith.addi %arg6, %c0_i32_11 : i32
      %c0_12 = arith.constant 0 : index
      %14 = arith.index_cast %13 : i32 to index
      %c0_13 = arith.constant 0 : index
      %c0_14 = arith.constant 0 : index
      %15 = vector.load %arg2[%c0_12, %14, %c0_13, %c0_14] : memref<1x18x18x4xbf16, #tpu.memory_space<vmem>>, vector<1x1x18x4xbf16>
      %16 = vector.shape_cast %15 : vector<1x1x18x4xbf16> to vector<18x4xbf16>
      %17 = vector.extract_strided_slice %16 {offsets = [1, 0], sizes = [16, 4], strides = [1, 1]} : vector<18x4xbf16> to vector<16x4xbf16>
      %c1_15 = arith.constant 1 : index
      %c0_16 = arith.constant 0 : index
      %c0_17 = arith.constant 0 : index
      %18 = vector.load %arg3[%c1_15, %c0_16, %c0_17] : memref<9x4x128xbf16, #tpu.memory_space<vmem>>, vector<1x4x128xbf16>
      %19 = vector.shape_cast %18 : vector<1x4x128xbf16> to vector<4x128xbf16>
      %cst_18 = arith.constant dense<0.000000e+00> : vector<16x128xf32>
      %20 = tpu.matmul %17, %19, %cst_18 {dimension_numbers = #tpu.dot_dimension_numbers<[1], [0], [0], [1], [0, 0, 1, 1], [], []>} : vector<16x4xbf16>, vector<4x128xbf16>, vector<16x128xf32> -> vector<16x128xf32>
      %21 = arith.addf %12, %20 : vector<16x128xf32>
      %c0_i32_19 = arith.constant 0 : i32
      %22 = arith.addi %arg6, %c0_i32_19 : i32
      %c0_20 = arith.constant 0 : index
      %23 = arith.index_cast %22 : i32 to index
      %c0_21 = arith.constant 0 : index
      %c0_22 = arith.constant 0 : index
      %24 = vector.load %arg2[%c0_20, %23, %c0_21, %c0_22] : memref<1x18x18x4xbf16, #tpu.memory_space<vmem>>, vector<1x1x18x4xbf16>
      %25 = vector.shape_cast %24 : vector<1x1x18x4xbf16> to vector<18x4xbf16>
      %26 = vector.extract_strided_slice %25 {offsets = [2, 0], sizes = [16, 4], strides = [1, 1]} : vector<18x4xbf16> to vector<16x4xbf16>
      %c2 = arith.constant 2 : index
      %c0_23 = arith.constant 0 : index
      %c0_24 = arith.constant 0 : index
      %27 = vector.load %arg3[%c2, %c0_23, %c0_24] : memref<9x4x128xbf16, #tpu.memory_space<vmem>>, vector<1x4x128xbf16>
      %28 = vector.shape_cast %27 : vector<1x4x128xbf16> to vector<4x128xbf16>
      %cst_25 = arith.constant dense<0.000000e+00> : vector<16x128xf32>
      %29 = tpu.matmul %26, %28, %cst_25 {dimension_numbers = #tpu.dot_dimension_numbers<[1], [0], [0], [1], [0, 0, 1, 1], [], []>} : vector<16x4xbf16>, vector<4x128xbf16>, vector<16x128xf32> -> vector<16x128xf32>
      %30 = arith.addf %21, %29 : vector<16x128xf32>
      %c1_i32_26 = arith.constant 1 : i32
      %31 = arith.addi %arg6, %c1_i32_26 : i32
      %c0_27 = arith.constant 0 : index
      %32 = arith.index_cast %31 : i32 to index
      %c0_28 = arith.constant 0 : index
      %c0_29 = arith.constant 0 : index
      %33 = vector.load %arg2[%c0_27, %32, %c0_28, %c0_29] : memref<1x18x18x4xbf16, #tpu.memory_space<vmem>>, vector<1x1x18x4xbf16>
      %34 = vector.shape_cast %33 : vector<1x1x18x4xbf16> to vector<18x4xbf16>
      %35 = vector.extract_strided_slice %34 {offsets = [0, 0], sizes = [16, 4], strides = [1, 1]} : vector<18x4xbf16> to vector<16x4xbf16>
      %c3 = arith.constant 3 : index
      %c0_30 = arith.constant 0 : index
      %c0_31 = arith.constant 0 : index
      %36 = vector.load %arg3[%c3, %c0_30, %c0_31] : memref<9x4x128xbf16, #tpu.memory_space<vmem>>, vector<1x4x128xbf16>
      %37 = vector.shape_cast %36 : vector<1x4x128xbf16> to vector<4x128xbf16>
      %cst_32 = arith.constant dense<0.000000e+00> : vector<16x128xf32>
      %38 = tpu.matmul %35, %37, %cst_32 {dimension_numbers = #tpu.dot_dimension_numbers<[1], [0], [0], [1], [0, 0, 1, 1], [], []>} : vector<16x4xbf16>, vector<4x128xbf16>, vector<16x128xf32> -> vector<16x128xf32>
      %39 = arith.addf %30, %38 : vector<16x128xf32>
      %c1_i32_33 = arith.constant 1 : i32
      %40 = arith.addi %arg6, %c1_i32_33 : i32
      %c0_34 = arith.constant 0 : index
      %41 = arith.index_cast %40 : i32 to index
      %c0_35 = arith.constant 0 : index
      %c0_36 = arith.constant 0 : index
      %42 = vector.load %arg2[%c0_34, %41, %c0_35, %c0_36] : memref<1x18x18x4xbf16, #tpu.memory_space<vmem>>, vector<1x1x18x4xbf16>
      %43 = vector.shape_cast %42 : vector<1x1x18x4xbf16> to vector<18x4xbf16>
      %44 = vector.extract_strided_slice %43 {offsets = [1, 0], sizes = [16, 4], strides = [1, 1]} : vector<18x4xbf16> to vector<16x4xbf16>
      %c4 = arith.constant 4 : index
      %c0_37 = arith.constant 0 : index
      %c0_38 = arith.constant 0 : index
      %45 = vector.load %arg3[%c4, %c0_37, %c0_38] : memref<9x4x128xbf16, #tpu.memory_space<vmem>>, vector<1x4x128xbf16>
      %46 = vector.shape_cast %45 : vector<1x4x128xbf16> to vector<4x128xbf16>
      %cst_39 = arith.constant dense<0.000000e+00> : vector<16x128xf32>
      %47 = tpu.matmul %44, %46, %cst_39 {dimension_numbers = #tpu.dot_dimension_numbers<[1], [0], [0], [1], [0, 0, 1, 1], [], []>} : vector<16x4xbf16>, vector<4x128xbf16>, vector<16x128xf32> -> vector<16x128xf32>
      %48 = arith.addf %39, %47 : vector<16x128xf32>
      %c1_i32_40 = arith.constant 1 : i32
      %49 = arith.addi %arg6, %c1_i32_40 : i32
      %c0_41 = arith.constant 0 : index
      %50 = arith.index_cast %49 : i32 to index
      %c0_42 = arith.constant 0 : index
      %c0_43 = arith.constant 0 : index
      %51 = vector.load %arg2[%c0_41, %50, %c0_42, %c0_43] : memref<1x18x18x4xbf16, #tpu.memory_space<vmem>>, vector<1x1x18x4xbf16>
      %52 = vector.shape_cast %51 : vector<1x1x18x4xbf16> to vector<18x4xbf16>
      %53 = vector.extract_strided_slice %52 {offsets = [2, 0], sizes = [16, 4], strides = [1, 1]} : vector<18x4xbf16> to vector<16x4xbf16>
      %c5 = arith.constant 5 : index
      %c0_44 = arith.constant 0 : index
      %c0_45 = arith.constant 0 : index
      %54 = vector.load %arg3[%c5, %c0_44, %c0_45] : memref<9x4x128xbf16, #tpu.memory_space<vmem>>, vector<1x4x128xbf16>
      %55 = vector.shape_cast %54 : vector<1x4x128xbf16> to vector<4x128xbf16>
      %cst_46 = arith.constant dense<0.000000e+00> : vector<16x128xf32>
      %56 = tpu.matmul %53, %55, %cst_46 {dimension_numbers = #tpu.dot_dimension_numbers<[1], [0], [0], [1], [0, 0, 1, 1], [], []>} : vector<16x4xbf16>, vector<4x128xbf16>, vector<16x128xf32> -> vector<16x128xf32>
      %57 = arith.addf %48, %56 : vector<16x128xf32>
      %c2_i32 = arith.constant 2 : i32
      %58 = arith.addi %arg6, %c2_i32 : i32
      %c0_47 = arith.constant 0 : index
      %59 = arith.index_cast %58 : i32 to index
      %c0_48 = arith.constant 0 : index
      %c0_49 = arith.constant 0 : index
      %60 = vector.load %arg2[%c0_47, %59, %c0_48, %c0_49] : memref<1x18x18x4xbf16, #tpu.memory_space<vmem>>, vector<1x1x18x4xbf16>
      %61 = vector.shape_cast %60 : vector<1x1x18x4xbf16> to vector<18x4xbf16>
      %62 = vector.extract_strided_slice %61 {offsets = [0, 0], sizes = [16, 4], strides = [1, 1]} : vector<18x4xbf16> to vector<16x4xbf16>
      %c6 = arith.constant 6 : index
      %c0_50 = arith.constant 0 : index
      %c0_51 = arith.constant 0 : index
      %63 = vector.load %arg3[%c6, %c0_50, %c0_51] : memref<9x4x128xbf16, #tpu.memory_space<vmem>>, vector<1x4x128xbf16>
      %64 = vector.shape_cast %63 : vector<1x4x128xbf16> to vector<4x128xbf16>
      %cst_52 = arith.constant dense<0.000000e+00> : vector<16x128xf32>
      %65 = tpu.matmul %62, %64, %cst_52 {dimension_numbers = #tpu.dot_dimension_numbers<[1], [0], [0], [1], [0, 0, 1, 1], [], []>} : vector<16x4xbf16>, vector<4x128xbf16>, vector<16x128xf32> -> vector<16x128xf32>
      %66 = arith.addf %57, %65 : vector<16x128xf32>
      %c2_i32_53 = arith.constant 2 : i32
      %67 = arith.addi %arg6, %c2_i32_53 : i32
      %c0_54 = arith.constant 0 : index
      %68 = arith.index_cast %67 : i32 to index
      %c0_55 = arith.constant 0 : index
      %c0_56 = arith.constant 0 : index
      %69 = vector.load %arg2[%c0_54, %68, %c0_55, %c0_56] : memref<1x18x18x4xbf16, #tpu.memory_space<vmem>>, vector<1x1x18x4xbf16>
      %70 = vector.shape_cast %69 : vector<1x1x18x4xbf16> to vector<18x4xbf16>
      %71 = vector.extract_strided_slice %70 {offsets = [1, 0], sizes = [16, 4], strides = [1, 1]} : vector<18x4xbf16> to vector<16x4xbf16>
      %c7 = arith.constant 7 : index
      %c0_57 = arith.constant 0 : index
      %c0_58 = arith.constant 0 : index
      %72 = vector.load %arg3[%c7, %c0_57, %c0_58] : memref<9x4x128xbf16, #tpu.memory_space<vmem>>, vector<1x4x128xbf16>
      %73 = vector.shape_cast %72 : vector<1x4x128xbf16> to vector<4x128xbf16>
      %cst_59 = arith.constant dense<0.000000e+00> : vector<16x128xf32>
      %74 = tpu.matmul %71, %73, %cst_59 {dimension_numbers = #tpu.dot_dimension_numbers<[1], [0], [0], [1], [0, 0, 1, 1], [], []>} : vector<16x4xbf16>, vector<4x128xbf16>, vector<16x128xf32> -> vector<16x128xf32>
      %75 = arith.addf %66, %74 : vector<16x128xf32>
      %c2_i32_60 = arith.constant 2 : i32
      %76 = arith.addi %arg6, %c2_i32_60 : i32
      %c0_61 = arith.constant 0 : index
      %77 = arith.index_cast %76 : i32 to index
      %c0_62 = arith.constant 0 : index
      %c0_63 = arith.constant 0 : index
      %78 = vector.load %arg2[%c0_61, %77, %c0_62, %c0_63] : memref<1x18x18x4xbf16, #tpu.memory_space<vmem>>, vector<1x1x18x4xbf16>
      %79 = vector.shape_cast %78 : vector<1x1x18x4xbf16> to vector<18x4xbf16>
      %80 = vector.extract_strided_slice %79 {offsets = [2, 0], sizes = [16, 4], strides = [1, 1]} : vector<18x4xbf16> to vector<16x4xbf16>
      %c8 = arith.constant 8 : index
      %c0_64 = arith.constant 0 : index
      %c0_65 = arith.constant 0 : index
      %81 = vector.load %arg3[%c8, %c0_64, %c0_65] : memref<9x4x128xbf16, #tpu.memory_space<vmem>>, vector<1x4x128xbf16>
      %82 = vector.shape_cast %81 : vector<1x4x128xbf16> to vector<4x128xbf16>
      %cst_66 = arith.constant dense<0.000000e+00> : vector<16x128xf32>
      %83 = tpu.matmul %80, %82, %cst_66 {dimension_numbers = #tpu.dot_dimension_numbers<[1], [0], [0], [1], [0, 0, 1, 1], [], []>} : vector<16x4xbf16>, vector<4x128xbf16>, vector<16x128xf32> -> vector<16x128xf32>
      %84 = arith.addf %75, %83 : vector<16x128xf32>
      %85 = vector.broadcast %0 : vector<1x128xf32> to vector<16x128xf32>
      %86 = arith.mulf %84, %85 : vector<16x128xf32>
      %87 = vector.broadcast %1 : vector<1x128xf32> to vector<16x128xf32>
      %88 = arith.addf %86, %87 : vector<16x128xf32>
      %cst_67 = arith.constant 2.000000e+01 : f32
      %89 = vector.broadcast %cst_67 : f32 to vector<16x128xf32>
      %90 = arith.minimumf %88, %89 : vector<16x128xf32>
      %91 = math.exp %90 : vector<16x128xf32>
      %cst_68 = arith.constant 1.000000e+00 : f32
      %92 = vector.broadcast %cst_68 : f32 to vector<16x128xf32>
      %93 = arith.addf %92, %91 : vector<16x128xf32>
      %cst_69 = arith.constant 1.000000e+00 : f32
      %94 = vector.broadcast %cst_69 : f32 to vector<16x128xf32>
      %95 = arith.addf %94, %91 : vector<16x128xf32>
      %96 = arith.mulf %93, %95 : vector<16x128xf32>
      %cst_70 = arith.constant 1.000000e+00 : f32
      %97 = vector.broadcast %cst_70 : f32 to vector<16x128xf32>
      %98 = arith.subf %96, %97 : vector<16x128xf32>
      %99 = arith.mulf %88, %98 : vector<16x128xf32>
      %cst_71 = arith.constant 1.000000e+00 : f32
      %100 = vector.broadcast %cst_71 : f32 to vector<16x128xf32>
      %101 = arith.addf %96, %100 : vector<16x128xf32>
      %102 = tpu.reciprocal %101 {approx = true} : vector<16x128xf32> -> vector<16x128xf32>
      %103 = arith.mulf %99, %102 : vector<16x128xf32>
      %104 = arith.truncf %103 : vector<16x128xf32> to vector<16x128xbf16>
      %c0_72 = arith.constant 0 : index
      %105 = arith.index_cast %arg6 : i32 to index
      %c0_73 = arith.constant 0 : index
      %c0_74 = arith.constant 0 : index
      %106 = vector.load %arg5[%c0_72, %105, %c0_73, %c0_74] : memref<1x16x16x128xbf16, #tpu.memory_space<vmem>>, vector<1x1x16x128xbf16>
      %107 = vector.shape_cast %106 : vector<1x1x16x128xbf16> to vector<16x128xbf16>
      %108 = vector.shape_cast %104 : vector<16x128xbf16> to vector<1x1x16x128xbf16>
      tpu.vector_store %arg5[%c0_72, %105, %c0_73, %c0_74], %108 {strides = array<i32>} : memref<1x16x16x128xbf16, #tpu.memory_space<vmem>>, vector<1x1x16x128xbf16>,
    }
    %c16_i32_2 = arith.constant 16 : i32
    return
  }
  func.func @transform_0(%arg0: i32, %arg1: i32) -> (i32, i32, i32, i32) {
    %c0_i32 = arith.constant 0 : i32
    %c0_i32_0 = arith.constant 0 : i32
    %c0_i32_1 = arith.constant 0 : i32
    %c0_i32_2 = arith.constant 0 : i32
    return %arg0, %c0_i32, %c0_i32_0, %c0_i32_1 : i32, i32, i32, i32
  }
  func.func @transform_1(%arg0: i32, %arg1: i32) -> (i32, i32, i32) {
    %c0_i32 = arith.constant 0 : i32
    %c0_i32_0 = arith.constant 0 : i32
    %c0_i32_1 = arith.constant 0 : i32
    return %c0_i32, %c0_i32_0, %arg1 : i32, i32, i32
  }
  func.func @transform_2(%arg0: i32, %arg1: i32) -> (i32, i32) {
    %c0_i32 = arith.constant 0 : i32
    %c0_i32_0 = arith.constant 0 : i32
    return %c0_i32, %arg1 : i32, i32
  }
  func.func @transform_3(%arg0: i32, %arg1: i32) -> (i32, i32, i32, i32) {
    %c0_i32 = arith.constant 0 : i32
    %c0_i32_0 = arith.constant 0 : i32
    %c0_i32_1 = arith.constant 0 : i32
    return %arg0, %c0_i32, %c0_i32_0, %arg1 : i32, i32, i32, i32
  }
}

</mosaic_0001>

<bundles_post_ra>
// kernel: tpu_custom_call.1
= control target key start
LH: loop header
LB: loop body
LE: loop exit
PB: predicated region body
PF: predicated region fallthrough
CT: control target
= control target key end

     0   :  { %8 = vsyncpa [#allocation3], 0  ;;  %s1551_s0 = inlined_call_operand.vmem [shape: bf16[2,18,18,4], index: 0, kind: input, shape index: {}]   ;;  %s1552_s1 = inlined_call_operand.vmem [shape: bf16[9,4,128], index: 1, kind: input, shape index: {}]   ;;  %s1553_s2 = inlined_call_operand.vmem [shape: f32[2,128], index: 2, kind: input, shape index: {}]   ;;  %s1554_s3 = inlined_call_operand.hbm [shape: bf16[2,16,16,128], index: 3, kind: output, shape index: {}]  }
   0x1   :  { %10 = vsyncpa [#allocation3 + $0x1], 0  ;;  %s1306_s12 = smov 0   ;;  %s1308_s13 = smov 0  }
   0x2   :  { %s1310_s14 = smov 0   ;;  %s1312_s15 = smov 0  }
   0x3   :  { %s1314_s16 = smov 0   ;;  %s1316_s17 = smov 0  }
   0x4 LB: > { %s947_s18 = sadd.s32 4294967295, %s1275_s17   ;;  %s948_s19 = sadd.s32 4294967294, %s1275_s17   ;;  %s1275_s17 = sphi %s1316_s17, %s16_s17   ;;  %s1271_s16 = sphi %s1314_s16, %s1561_s16   ;;  %s1267_s15 = sphi %s1312_s15, %s1560_s15   ;;  %s1263_s14 = sphi %s1310_s14, %s1559_s14   ;;  %s1259_s13 = sphi %s1308_s13, %s1558_s13   ;;  %s1255_s12 = sphi %s1306_s12, %s1557_s12  }
   0x5   : > { %s28_s20 = sadd.s32 1, %s1271_s16  ;;  %s115_s21 = sadd.s32 1, %s1263_s14 }
   0x6   : > { %p30_p0 = scmp.ge.s32.totalorder %s28_s20, 2  ;;  %p125_p1 = scmp.ne.s32.totalorder %s1263_s14, %s1259_s13 }
   0x7   : > { %p126_p2 = scmp.eq.s32.totalorder %s947_s18, 1  ;;  %p131_p3 = scmp.ne.s32.totalorder %s1259_s13, %s1255_s12 }
   0x8   : > { %s1563_s20 = smov (%p30_p0, %s28_s20), 0  ;;  %p132_p5 = scmp.eq.s32.totalorder %s948_s19, 1 }
   0x9   : > { %p1346_p4 = por %p126_p2, %p125_p1  ;;  %s110_s23 = ssub.s32 %s1271_s16, %s1563_s20 }
   0xa   : > { %p953_p6 = scmp.ge.s32.totalorder %s1275_s17, 1  ;;  %p113_p7 = scmp.eq.s32.totalorder %s110_s23, 0 }
   0xb   : > { %p1353_p8 = por %p132_p5, %p131_p3  ;;  %p172_p9 = scmp.lt.s32.totalorder %s1275_s17, 3 }
   0xc   : > { %s1359_s25 = scalar_select %p113_p7, %s1263_s14, %s115_s21  }
   0xd   : > { %p173_p10 = pnand %p953_p6, %p172_p9 }
   0xe   : > { %s201_s26 = sand.u32 (!%p173_p10), 1, %s1259_s13   ;;  %p204_p11 = scmp.lt.s32.totalorder (!%p173_p10), %s1267_s15, 1  ;;  %v1366_v0 = vld [vmem:[%s1553_s2] ss:$0 sm:$0xff] (!%p173_p10)  ;;  %v1371_v1 = vld [vmem:[%s1553_s2 + $0x1] ss:$0 sm:$0xff] (!%p173_p10) }
   0xf   : > { %176 = sbr.rel (%p173_p10) target bundleno = 359 (0x167), region = 32  ;;  %s1375_s4 = sshll.u32 (!%p173_p10), %s201_s26, 7 }
  0x10   : > { %s203_s10 = scalar_lea.vmem (!%p173_p10), [#allocation2], %s1375_s4  ;;  %s1384_s11 = smov (!%p173_p10), 0  }
  0x16   : > { %s205_s5 = scalar_select %p204_p11, %s1267_s15, 1 }
  0x18   : > { %s1111_s6 = smul.u32 216, %s205_s5 }
  0x1a   : > { %s1381_s9 = scalar_lea.vmem %s1551_s0, %s1111_s6 }
  0x1b LB: >> { %vm260_vm0 = vcmask 1041408   ;;  %v970_v2 = vld [vmem:[%s1552_s1 + $0x8] sm:$0x3]  ;;  %v957_v3 = vld [vmem:[%s1552_s1 + $0x2] sm:$0x3]  ;;  %v1281_v4 = vmov 0.0   ;;  %s1279_s11 = sphi %s1384_s11, %s225_s11  }
  0x1c   : >> { %1051 = vmatprep.subr.bf16.mxu0 %v1281_v4  ;;  %1027 = vmatprep.subr.bf16.mxu1 %v1281_v4  ;;  %v489_v5 = vsel %vm260_vm0, %v970_v2, 0  ;;  %v262_v6 = vsel %vm260_vm0, %v957_v3, 0  ;;  %s999_s27 = smul.u32 12, %s1279_s11  ;;  %vm1282_vm1 = vmmov 0   ;;  %v232_v16 = vld [vmem:[%s1552_s1] sm:$0x3] }
  0x1d   : >> { %1052 = vmatpush3.bf16.msra.mxu0 %v489_v5  ;;  %1028 = vmatpush3.bf16.msra.mxu1 %v262_v6  ;;  %vm243_vm2 = vsmask.f32 7424  ;;  %v973_v21 = vld [vmem:[%s1552_s1 + $0xa] sm:$0x3]  ;;  %vm256_vm3 = vcmask 31744   ;;  %v308_v25 = vsel %vm260_vm0, %v232_v16, 0 }
  0x1e   : >> { %1029 = vmatprep.mubr.msk.bf16.mxu1 %vm1282_vm1, %v1281_v4  ;;  %1053 = vmatprep.mubr.msk.bf16.mxu0 %vm1282_vm1, %v1281_v4  ;;  %s1406_s28 = scalar_lea.vmem %s1381_s9, %s999_s27  ;;  %v543_v27 = vsel %vm260_vm0, %v973_v21, 0  ;;  %vm353_vm4 = vcmask 1046528   ;;  %v962_v31 = vld [vmem:[%s1552_s1 + $0x4] sm:$0x3]  ;;  %v978_v32 = vld [vmem:[%s1552_s1 + $0xc] sm:$0x3] }
  0x1f   : >> { %1057 = vmatprep.subr.bf16.mxu0 %v1281_v4  ;;  %1033 = vmatprep.subr.bf16.mxu1 %v1281_v4  ;;  %v1179_v7 = vld [vmem:[%s1406_s28] sm:$0xff]   ;;  %v1180_v8 = vld [vmem:[%s1406_s28 + $0x8] ss:$0 sps:$4 sm:$0x11]   ;;  %v1412_v9 = vld [vmem:[%s1406_s28 + $0xc] sm:$0xff]   ;;  %v361_v34 = vsel %vm260_vm0, %v962_v31, 0 }
  0x20   : >> { %v245_v10 = vshrl.u32 %v1179_v7, 16  ;;  %v247_v11 = vshll.u32 %v1179_v7, 16  ;;  %v252_v12 = vshll.u32 %v1180_v8, 16  ;;  %v1182_v13 = vld [vmem:[%s1406_s28 + $0x14] ss:$0 sps:$4 sm:$0x11]  }
  0x21   : >> { %v474_v14 = vshrl.u32 %v1412_v9, 16  ;;  %v476_v15 = vshll.u32 %v1412_v9, 16  ;;  %v481_v19 = vshll.u32 %v1182_v13, 16  ;;  %v536_v29 = vrot.slane %v1412_v9, 1  ;;  %v967_v38 = vld [vmem:[%s1552_s1 + $0x6] sm:$0x3] }
  0x22   : >> { %v249_v17 = vrot.slane %v247_v11, 1  ;;  %v254_v18 = vrot.slane %v252_v12, 1  ;;  %v537_v30 = vrot.slane %v1182_v13, 1  ;;  %v606_v35 = vsel %vm260_vm0, %v978_v32, 0  ;;  %v1183_v39 = vld [vmem:[%s1406_s28 + $0x18] sm:$0xff]   ;;  %s1002_s5 = sshll.u32 %s1279_s11, 3 }
  0x23   : >> { %v478_v20 = vrot.slane %v476_v15, 1  ;;  %v483_v23 = vrot.slane %v481_v19, 1  ;;  %v354_v36 = vrot.slane %v1179_v7, 1  ;;  %v355_v37 = vrot.slane %v1180_v8, 1  ;;  %v981_v40 = vld [vmem:[%s1552_s1 + $0xe] sm:$0x3]  ;;  %s812_s6 = scalar_lea.vmem %s203_s10, %s1002_s5 [#allocation2] }
  0x24   : >> { %v250_v22 = vor.u32 %v249_v17, %v245_v10  ;;  %v538_v33 = vsel %vm353_vm4, %v536_v29, %v537_v30  ;;  %v424_v42 = vsel %vm260_vm0, %v967_v38, 0  ;;  %v1184_v43 = vld [vmem:[%s1406_s28 + $0x20] ss:$0 sps:$4 sm:$0x11]   ;;  %v658_v44 = vshll.u32 %v1183_v39, 16  ;;  %s225_s11 = sadd.s32 1, %s1279_s11  }
  0x25   : >> { %v479_v24 = vor.u32 %v478_v20, %v474_v14  ;;  %v356_v41 = vsel %vm353_vm4, %v354_v36, %v355_v37  ;;  %v671_v45 = vsel %vm260_vm0, %v981_v40, 0  ;;  %v656_v46 = vshrl.u32 %v1183_v39, 16  ;;  %v984_v51 = vld [vmem:[%s1552_s1 + $0x10] sm:$0x3]  ;;  %p222_p12 = scmp.ge.s32.totalorder %s225_s11, 16  }
  0x26   : >> { %v255_v26 = vsel %vm243_vm2, %v250_v22, %v254_v18  ;;  %v660_v47 = vrot.slane %v658_v44, 1  ;;  %v663_v48 = vshll.u32 %v1184_v43, 16  ;;  %v725_v53 = vsel %vm260_vm0, %v984_v51, 0  ;;  %s1003_s7 = sshll.u32 (%p222_p12), %s1267_s15, 11  ;;  %s830_s21 = sshll.u32 (%p222_p12), %s203_s10, 4  ;;  %s1501_s21 = int_to_ptr.vmem [resolvable:$true] %s830_s21 }
  0x27   : >> { %1030 = vmatmul.mubr.msk.bf16.vlgmr.msra.gmra.mrb[0].mxu1 %vm256_vm3, %v255_v26  ;;  %v484_v28 = vsel %vm243_vm2, %v479_v24, %v483_v23  ;;  %v718_v54 = vrot.slane %v1183_v39, 1  ;;  %v719_v55 = vrot.slane %v1184_v43, 1  ;;  %s1497_s19 = scalar_lea.hbm (%p222_p12), %s1554_s3, %s1003_s7  ;;  %s1505_s11 = scalar_lea.sflag (%p222_p12), [#allocation3], %s201_s26 }
  0x28   : >> { %1054 = vmatmul.mubr.msk.bf16.vlgmr.msra.gmra.mrb[0].mxu0 %vm256_vm3, %v484_v28  ;;  %1034 = vmatpush3.bf16.msra.mxu1 %v308_v25  ;;  %v661_v49 = vor.u32 %v660_v47, %v656_v46  ;;  %v665_v50 = vrot.slane %v663_v48, 1  ;;  %s1193_s9 = scalar_lea.vmem (%p222_p12), %s1501_s21, 2048  ;;  %s1283_s15 = smov (%p222_p12), [#allocation2]  }
  0x29   : >> { %1058 = vmatpush3.bf16.msra.mxu0 %v543_v27  ;;  %1035 = vmatprep.mubr.msk.bf16.mxu1 %vm1282_vm1, %v1281_v4  ;;  %v720_v56 = vsel %vm353_vm4, %v718_v54, %v719_v55  ;;  %p1194_p13 = scmp.ne.s32.totalorder (%p222_p12), %s1501_s21, %s1193_s9  ;;  %s1197_s23 = sshll.u32 (%p222_p12), %s1283_s15, 4  ;;  %s1198_s23 = int_to_ptr.vmem [resolvable:$false] %s1197_s23 }
  0x2a   : >> { %1059 = vmatprep.mubr.msk.bf16.mxu0 %vm1282_vm1, %v1281_v4  ;;  %1063 = vmatprep.subr.bf16.mxu0 %v1281_v4  ;;  %v666_v52 = vsel %vm243_vm2, %v661_v49, %v665_v50  ;;  %s1199_s27 = scalar_lea.vmem (%p222_p12), %s1198_s23, 4096  ;;  %p1200_p2 = scmp.lt.s32.totalorder (%p222_p12), %s1501_s21, %s1198_s23 }
  0x2b   : >> { %1039 = vmatprep.subr.bf16.mxu1 %v1281_v4  ;;  %p1195_p0 = pnand (%p222_p12), %p1194_p13, %p1346_p4  ;;  %p1201_p3 = scmp.lt.s32.totalorder (%p222_p12), %s1199_s27, %s1193_s9 }
  0x2d   : > { %p1196_p1 = pneg (%p222_p12), %p1195_p0  ;;  %p1202_p5 = por (%p222_p12), %p1201_p3, %p1200_p2 }
  0x2f   : > { %p1203_p6 = pnand (%p222_p12), %p1202_p5, %p1196_p1 }
  0x33   : >> { %1036 = vmatmul.mubr.msk.bf16.vlgmr.msra.gmra.mrb[0].mxu1 %vm256_vm3, %v1179_v7 }
  0x34   : >> { %1060 = vmatmul.mubr.msk.bf16.vlgmr.msra.gmra.mrb[0].mxu0 %vm256_vm3, %v538_v33  ;;  %1040 = vmatpush3.bf16.msra.mxu1 %v361_v34 }
  0x35   : >> { %1064 = vmatpush3.bf16.msra.mxu0 %v606_v35  ;;  %1041 = vmatprep.mubr.msk.bf16.mxu1 %vm1282_vm1, %v1281_v4 }
  0x36   : >> { %1065 = vmatprep.mubr.msk.bf16.mxu0 %vm1282_vm1, %v1281_v4  ;;  %1069 = vmatprep.subr.bf16.mxu0 %v1281_v4 }
  0x37   : >> { %1045 = vmatprep.subr.bf16.mxu1 %v1281_v4 }
  0x3f   : >> { %1042 = vmatmul.mubr.msk.bf16.vlgmr.msra.gmra.mrb[0].mxu1 %vm256_vm3, %v356_v41 }
  0x40   : >> { %1066 = vmatmul.mubr.msk.bf16.vlgmr.msra.gmra.mrb[0].mxu0 %vm256_vm3, %v1183_v39  ;;  %1046 = vmatpush3.bf16.msra.mxu1 %v424_v42 }
  0x41   : >> { %1070 = vmatpush3.bf16.msra.mxu0 %v671_v45  ;;  %1047 = vmatprep.mubr.msk.bf16.mxu1 %vm1282_vm1, %v1281_v4 }
  0x42   : >> { %1071 = vmatprep.mubr.msk.bf16.mxu0 %vm1282_vm1, %v1281_v4  ;;  %1075 = vmatprep.subr.bf16.mxu0 %v1281_v4 }
  0x4b   : >> { %1048 = vmatmul.mubr.msk.bf16.vlgmr.msra.gmra.mrb[0].mxu1 %vm256_vm3, %v1412_v9 }
  0x4c   : >> { %1072 = vmatmul.mubr.msk.bf16.vlgmr.msra.gmra.mrb[0].mxu0 %vm256_vm3, %v666_v52 }
  0x4d   : >> { %1076 = vmatpush3.bf16.msra.mxu0 %v725_v53  ;;  %1077 = vmatprep.mubr.msk.bf16.mxu0 %vm1282_vm1, %v1281_v4 }
  0x58   : >> { %1078 = vmatmul.mubr.msk.bf16.vlgmr.msra.gmra.mrb[0].mxu0 %vm256_vm3, %v720_v56 }
 0x11e   : >> { %v460_v57 = vpop.f32.mrb[0].mxu1 }
 0x11f   : >> { %v1049_v58 = vpop.f32.mrb[1].mxu1 }
 0x120   : >> { %v463_v59 = vpop.f32.mrb[2].mxu1 }
 0x121   : >> { %v1050_v60 = vpop.f32.mrb[3].mxu1 }
 0x12b   : >> { %v761_v61 = vpop.f32.mrb[0].mxu0 }
 0x12c   : >> { %v1081_v62 = vadd.f32 %v761_v61, %v460_v57  ;;  %v1079_v63 = vpop.f32.mrb[1].mxu0 }
 0x12d   : >> { %v764_v2 = vpop.f32.mrb[2].mxu0 }
 0x12e   : >> { %v774_v3 = vmul.f32 %v1081_v62, %v1366_v0  ;;  %v1082_v5 = vadd.f32 %v764_v2, %v463_v59  ;;  %v1080_v6 = vpop.f32.mrb[3].mxu0 }
 0x130   : >> { %v780_v4 = vadd.f32 %v1371_v1, %v774_v3  ;;  %v775_v7 = vmul.f32 %v1082_v5, %v1366_v0 }
 0x132   : >> { %v782_v8 = vmin.f32 %v780_v4, 20.0  ;;  %v781_v9 = vadd.f32 %v1371_v1, %v775_v7 }
 0x134   : >> { %v784_v10 = vmul.f32 1.442695, %v782_v8  ;;  %v783_v11 = vmin.f32 %v781_v9, 20.0 }
 0x136   : >> { %1185 = vpow2.f32 %v784_v10  ;;  %v786_v12 = vmul.f32 1.442695, %v783_v11 }
 0x138   : >> { %1187 = vpow2.f32 %v786_v12 }
 0x140   : >> { %v1186_v13 = vpop.eup %1185 }
 0x141   : >> { %v788_v14 = vadd.f32 1.0, %v1186_v13 }
 0x142   : >> { %v1188_v15 = vpop.eup %1187 }
 0x143   : >> { %v790_v16 = vmul.f32 %v788_v14, %v788_v14  ;;  %v789_v17 = vadd.f32 1.0, %v1188_v15 }
 0x145   : >> { %v796_v18 = vadd.f32 1.0, %v790_v16  ;;  %v791_v19 = vmul.f32 %v789_v17, %v789_v17  ;;  %v988_v21 = vadd.f32 -1.0, %v790_v16 }
 0x147   : >> { %1189 = vrcp.f32 %v796_v18  ;;  %v797_v20 = vadd.f32 1.0, %v791_v19  ;;  %v989_v22 = vadd.f32 -1.0, %v791_v19  ;;  %v794_v24 = vmul.f32 %v988_v21, %v780_v4 }
 0x149   : >> { %1191 = vrcp.f32 %v797_v20  ;;  %v795_v25 = vmul.f32 %v989_v22, %v781_v9 }
 0x151   : >> { %v1190_v23 = vpop.eup %1189 }
 0x152   : >> { %v800_v27 = vmul.f32 %v1190_v23, %v794_v24  ;;  %224 = sbr.rel (!%p222_p12) target bundleno = 27 (0x1b), region = 92 }
 0x153   : >> { %v1192_v26 = vpop.eup %1191 }
 0x154   : >> { %v801_v28 = vmul.f32 %v1192_v26, %v795_v25 }
 0x156   : >> { %v1007_v29 = vpack.c.bf16 %v801_v28, %v800_v27 }
 0x158   : >> { %1008 = vst [vmem:[%s812_s6] sm:$0xff] %v1007_v29  }
 0x159   : > { %1206 = shalt.err (!%p1203_p6)
}
 0x15a   : > { %s1207_s26 = scalar_lea.hbm %s1497_s19, 2048  ;;  %s1211_s29 = scalar_lea.hbm %s1554_s3, 4096 }
 0x15b   : > { %p1208_p7 = scmp.ne.s32.totalorder %s1497_s19, %s1207_s26  ;;  %p1212_p11 = scmp.lt.u32.totalorder %s1497_s19, %s1554_s3 }
 0x15c   : > { %p1213_p12 = scmp.lt.u32.totalorder %s1211_s29, %s1207_s26  ;;  %p1215_p0 = scmp.lt.u32.totalorder %s1207_s26, %s1497_s19 }
 0x15d   : > { %p1209_p9 = pnand %p1208_p7, %p1346_p4 }
 0x15e   : > { %p1214_p13 = por %p1213_p12, %p1212_p11 }
 0x15f   : > { %p1210_p10 = pneg %p1209_p9 }
 0x160   : > { %p1216_p1 = por %p1215_p0, %p1214_p13 }
 0x162   : > { %p1217_p2 = pnand %p1216_p1, %p1210_p10 }
 0x164   : > { %1220 = shalt.err (!%p1217_p2)
}
 0x165   : > { %s1284_s5 = smov 64   ;;  %s1285_s6 = smov 4  }
 0x166   : > { %1112 = dma.vmem_to_hbm [thread:$0]  (%p1346_p4), %s1501_s21, 2048, %s1497_s19, %s1505_s11, %s1284_s5, %s1284_s5, %s1285_s6  }
 0x167 PF: > { %p1118_p3 = scmp.ge.s32.totalorder %s1275_s17, 2  ;;  %s845_s7 = sand.u32 1, %s1255_s12  }
 0x168   : > { %s846_s8 = scalar_lea.sflag [#allocation3], %s845_s7 }
 0x169   : > { %p1115_p5 = pnand %p1118_p3, %p1353_p8 }
 0x16b   : > { %1250 = dma.done.wait (!%p1115_p5), %s846_s8, 2048  }
 0x16c   : > { %1252 = vsyncadd (!%p1115_p5), %s846_s8, 4294965248  ;;  %s16_s17 = sadd.s32 1, %s1275_s17   ;;  %s1557_s12 = smov %s1259_s13 }
 0x16d   : > { %p13_p6 = scmp.ge.s32.totalorder %s16_s17, 4   ;;  %s1558_s13 = smov %s1263_s14 }
 0x16e   : > { %s1559_s14 = smov %s1359_s25  ;;  %s1560_s15 = smov %s1271_s16 }
 0x16f   : > { %s1561_s16 = smov %s1563_s20  ;;  %15 = sbr.rel (!%p13_p6) target bundleno = 4 (0x4), region = 103 }
 0x176   :  { %851 = vsyncpa [#allocation3], 1 }
 0x177   :  { %853 = vsyncpa [#allocation3 + $0x1], 1 }

</bundles_post_ra>
